<compile_context>
chip_gen: v7x
topology: tpu7x:2x2x1
jax: 0.10.0
libtpu: 0.0.40
codegen_flags: <defaults>
</compile_context>

<pallas_src>
import jax
import jax.numpy as jnp
from jax.experimental import pallas as pl
from jax.experimental.pallas import tpu as pltpu

LATENT_DIM = 32
PACK = 4                       # original rows per packed row (4 * 32 = 128 lanes)
PACKED_D = PACK * LATENT_DIM   # 128
MAX_PACKED_BLOCK_ROWS = 8192   # 8192 * 128 * 4 B = 4 MiB of x per pipeline buffer


def _round_up(n, m):
    return ((n + m - 1) // m) * m


def rescale_softmax_kernel(xp_ref, wsel_ref, b_ref, o_ref):
    # xp_ref:   (TBp, 128) VMEM  -- 4 original rows packed per row
    # wsel_ref: (128, 4)   VMEM  -- block-diagonal weight selector (resident)
    # b_ref:    (1,)       SMEM  -- scalar bias
    # o_ref:    (TBp, 4)   VMEM  -- one logit/softmax value per original row
    logits = jnp.dot(xp_ref[...], wsel_ref[...],
                     preferred_element_type=jnp.float32) + b_ref[0]
    # softmax over the size-1 output-feature axis == exp(z - z):
    # 1.0 for finite z, NaN for +-Inf/NaN — matches torch.F.softmax exactly.
    # (Mosaic/XLA do not apply the unsafe z - z -> 0 FP simplification.)
    o_ref[...] = jnp.exp(logits - logits).astype(o_ref.dtype)


def neural_net_forward(x, weight, bias, *,
                       max_packed_block_rows=MAX_PACKED_BLOCK_ROWS):
    """x: (B, 32) f32, weight: (1, 32) f32, bias: (1,) f32 -> (B, 1) f32."""
    B, D = x.shape
    assert D == LATENT_DIM
    b4 = B // PACK
    rem = B - b4 * PACK

    pieces = []
    if b4 > 0:
        # Zero-copy packed view when B % 4 == 0; only a ragged batch pays a
        # prefix-slice of x (rare — batches are normally multiples of 4).
        x_main = x if rem == 0 else x[: b4 * PACK]
        xp = x_main.reshape(b4, PACKED_D)               # free bitcast reshape

        # Block-diagonal selector carrying the Linear weight:
        # wsel[32*g + d, g] = weight[0, d]   (built once, 2 KiB, VMEM-resident)
        wsel = jnp.kron(jnp.eye(PACK, dtype=x.dtype),
                        weight.reshape(LATENT_DIM, 1).astype(x.dtype))

        if b4 <= 8:
            tbp = b4                                    # full-extent block
        else:
            # >= 2 parallel blocks (v7x megacore), capped at multi-MiB tiles.
            tbp = min(max_packed_block_rows, _round_up(pl.cdiv(b4, 2), 8))
        grid = (pl.cdiv(b4, tbp),)                      # ragged last block OK

        out_packed = pl.pallas_call(
            rescale_softmax_kernel,
            out_shape=jax.ShapeDtypeStruct((b4, PACK), x.dtype),
            grid=grid,
            in_specs=[
                pl.BlockSpec((tbp, PACKED_D), lambda i: (i, 0)),       # x tiles
                pl.BlockSpec((PACKED_D, PACK), lambda i: (0, 0)),      # selector
                pl.BlockSpec(memory_space=pltpu.MemorySpace.SMEM),     # bias
            ],
            out_specs=pl.BlockSpec((tbp, PACK), lambda i: (i, 0)),
            compiler_params=pltpu.CompilerParams(
                dimension_semantics=("parallel",),      # megacore / v7x 2-TC
                vmem_limit_bytes=32 * 1024 * 1024,
            ),
        )(xp, wsel, bias)
        pieces.append(out_packed.reshape(b4 * PACK, 1))  # free bitcast reshape

    if rem > 0:
        # <= 3 leftover rows: plain JAX (negligible traffic).
        xt = x[b4 * PACK:]
        zt = xt @ weight.T + bias
        pieces.append(jnp.exp(zt - zt).astype(x.dtype))

    return pieces[0] if len(pieces) == 1 else jnp.concatenate(pieces, axis=0)


if __name__ == "__main__":
    key = jax.random.PRNGKey(0)
    k_x, k_w, k_b = jax.random.split(key, 3)

    B = 8
    x = jax.random.normal(k_x, (B, LATENT_DIM), dtype=jnp.float32)

    # Deterministic parameter init (mimicking nn.Linear's uniform init range).
    bound = 1.0 / (LATENT_DIM ** 0.5)
    weight = jax.random.uniform(
        k_w, (1, LATENT_DIM), minval=-bound, maxval=bound, dtype=jnp.float32
    )
    bias = jax.random.uniform(
        k_b, (1,), minval=-bound, maxval=bound, dtype=jnp.float32
    )

    out = neural_net_forward(x, weight, bias)
    out = jax.block_until_ready(out)

    # Reference: softmax over the size-1 feature axis of the (B, 1) logits.
    logits_ref = x @ weight.T + bias
    ref = jax.nn.softmax(logits_ref, axis=-1)
    assert out.shape == (B, 1), out.shape
    assert jnp.allclose(out, ref, atol=1e-6), (out, ref)

    # Ragged batch: exercises the partial last grid block and the tail path.
    B2 = 37  # b4 = 9 -> two grid blocks (last partial), rem = 1
    x2 = jax.random.normal(k_x, (B2, LATENT_DIM), dtype=jnp.float32)
    out2 = jax.block_until_ready(neural_net_forward(x2, weight, bias))
    ref2 = jax.nn.softmax(x2 @ weight.T + bias, axis=-1)
    assert out2.shape == (B2, 1), out2.shape
    assert jnp.allclose(out2, ref2, atol=1e-6), (out2, ref2)

    print("KERNEL_OK")
</pallas_src>

<mosaic_0001>
module attributes {stable_mosaic.version = 11 : i64} {
  func.func @rescale_softmax_kernel(%arg0: i32, %arg1: memref<2x128xf32, #tpu.memory_space<vmem>>, %arg2: memref<128x4xf32, #tpu.memory_space<vmem>>, %arg3: memref<1xf32, #tpu.memory_space<smem>>, %arg4: memref<2x4xf32, #tpu.memory_space<vmem>>) attributes {dimension_semantics = [#tpu.dimension_semantics<parallel>], iteration_bounds = array<i64: 1>, scalar_prefetch = 0 : i64, scratch_operands = 0 : i64, tpu.core_type = #tpu.core_type<tc>, window_params = [{transform_indices = @transform_0, window_bounds = array<i64: 2, 128>}, {pipeline_mode = #tpu.pipeline_mode<synchronous>, transform_indices = @transform_1, window_bounds = array<i64: 128, 4>}, {transform_indices = @transform_2, window_bounds = array<i64: 1>}, {transform_indices = @transform_3, window_bounds = array<i64: 2, 4>}]} {
    %c0 = arith.constant 0 : index
    %c0_0 = arith.constant 0 : index
    %0 = vector.load %arg1[%c0, %c0_0] : memref<2x128xf32, #tpu.memory_space<vmem>>, vector<2x128xf32>
    %c0_1 = arith.constant 0 : index
    %c0_2 = arith.constant 0 : index
    %1 = vector.load %arg2[%c0_1, %c0_2] : memref<128x4xf32, #tpu.memory_space<vmem>>, vector<128x4xf32>
    %cst = arith.constant dense<0.000000e+00> : vector<2x4xf32>
    %2 = tpu.matmul %0, %1, %cst {dimension_numbers = #tpu.dot_dimension_numbers<[1], [0], [0], [1], [0, 0, 1, 1], [], []>} : vector<2x128xf32>, vector<128x4xf32>, vector<2x4xf32> -> vector<2x4xf32>
    %c0_3 = arith.constant 0 : index
    %3 = memref.load %arg3[%c0_3] : memref<1xf32, #tpu.memory_space<smem>>
    %4 = vector.broadcast %3 : f32 to vector<2x4xf32>
    %5 = arith.addf %2, %4 : vector<2x4xf32>
    %6 = arith.subf %5, %5 : vector<2x4xf32>
    %7 = math.exp %6 : vector<2x4xf32>
    %c0_4 = arith.constant 0 : index
    %c0_5 = arith.constant 0 : index
    %8 = vector.load %arg4[%c0_4, %c0_5] : memref<2x4xf32, #tpu.memory_space<vmem>>, vector<2x4xf32>
    tpu.vector_store %arg4[%c0_4, %c0_5], %7 {strides = array<i32>} : memref<2x4xf32, #tpu.memory_space<vmem>>, vector<2x4xf32>,
    return
  }
  func.func @transform_0(%arg0: i32) -> (i32, i32) {
    %c0_i32 = arith.constant 0 : i32
    %c0_i32_0 = arith.constant 0 : i32
    return %arg0, %c0_i32 : i32, i32
  }
  func.func @transform_1(%arg0: i32) -> (i32, i32) {
    %c0_i32 = arith.constant 0 : i32
    %c0_i32_0 = arith.constant 0 : i32
    %c0_i32_1 = arith.constant 0 : i32
    return %c0_i32, %c0_i32_0 : i32, i32
  }
  func.func @transform_2(%arg0: i32) -> i32 {
    %c0_i32 = arith.constant 0 : i32
    %c0_i32_0 = arith.constant 0 : i32
    return %c0_i32 : i32
  }
  func.func @transform_3(%arg0: i32) -> (i32, i32) {
    %c0_i32 = arith.constant 0 : i32
    %c0_i32_0 = arith.constant 0 : i32
    return %arg0, %c0_i32 : i32, i32
  }
}

</mosaic_0001>

<bundles_post_ra>
// kernel: tpu_custom_call.1
= control target key start
LH: loop header
LB: loop body
LE: loop exit
PB: predicated region body
PF: predicated region fallthrough
CT: control target
= control target key end

     0   :  { %v230_v3 = vmov 0.0|0.0   ;;  %vm231_vm0 = vmmov 0   ;;  %v232_v6 = vmov 0.0   ;;  %s320_s0 = inlined_call_operand.vmem [shape: f32[2,128], index: 0, kind: input, shape index: {}]   ;;  %s321_s1 = inlined_call_operand.vmem [shape: f32[128,4], index: 1, kind: input, shape index: {}]   ;;  %s322_s2 = inlined_call_operand.<no memory space> [shape: f32[1], index: 2, kind: input, shape index: {}]   ;;  %s323_s3 = inlined_call_operand.hbm [shape: f32[2,4], index: 3, kind: output, shape index: {}]  }
   0x1   :  { %v17_v0 = vld [vmem:[%s321_s1] sm:$0xff]  ;;  %v18_v1 = vld [vmem:[%s321_s1 + $0x8] sm:$0xff]  ;;  %v19_v2 = vld [vmem:[%s321_s1 + $0x10] sm:$0xff]  ;;  %176 = vmatprep.subr.bf16.mxu0 %v230_v3  ;;  %173 = vmatprep.mubr.msk.f32.mxu0 %vm231_vm0, %v232_v6 }
   0x2   :  { %v177_v4 = vpack.c.bf16 %v18_v1, %v17_v0  ;;  %v20_v5 = vld [vmem:[%s321_s1 + $0x18] sm:$0xff]  ;;  %v21_v8 = vld [vmem:[%s321_s1 + $0x20] sm:$0xff]  ;;  %v22_v9 = vld [vmem:[%s321_s1 + $0x28] sm:$0xff] }
   0x3   :  { %v180_v7 = vpack.c.bf16 %v20_v5, %v19_v2 }
   0x4   :  { %178 = vmatpush3.bf16.msra.mxu0 %v177_v4 }
   0x5   :  { %179 = vmatprep.subr.bf16.mxu0 %v230_v3 }
   0x6   :  { %9 = vsyncpa [#allocation4], 0  ;;  %v183_v10 = vpack.c.bf16 %v22_v9, %v21_v8  ;;  %v23_v11 = vld [vmem:[%s321_s1 + $0x30] sm:$0xff]  ;;  %v24_v12 = vld [vmem:[%s321_s1 + $0x38] sm:$0xff]  ;;  %v34_v27 = vstv %s322_s2  ;;  %vm108_vm1 = vcmask 25600  }
   0x7   :  { %v186_v13 = vpack.c.bf16 %v24_v12, %v23_v11  ;;  %v25_v14 = vld [vmem:[%s321_s1 + $0x40] sm:$0xff]  ;;  %v26_v15 = vld [vmem:[%s321_s1 + $0x48] sm:$0xff]  ;;  %v27_v17 = vld [vmem:[%s321_s1 + $0x50] sm:$0xff] }
   0x8   :  { %181 = vmatpush3.bf16.msra.mxu0 %v180_v7  ;;  %v189_v16 = vpack.c.bf16 %v26_v15, %v25_v14  ;;  %v28_v18 = vld [vmem:[%s321_s1 + $0x58] sm:$0xff]  ;;  %v29_v20 = vld [vmem:[%s321_s1 + $0x60] sm:$0xff]  ;;  %v30_v21 = vld [vmem:[%s321_s1 + $0x68] sm:$0xff] }
   0x9   :  { %182 = vmatprep.subr.bf16.mxu0 %v230_v3  ;;  %v192_v19 = vpack.c.bf16 %v28_v18, %v27_v17  ;;  %v195_v22 = vpack.c.bf16 %v30_v21, %v29_v20  ;;  %v31_v23 = vld [vmem:[%s321_s1 + $0x70] sm:$0xff]  ;;  %v32_v24 = vld [vmem:[%s321_s1 + $0x78] sm:$0xff]  ;;  %v16_v26 = vld [vmem:[%s320_s0] sm:$0x3]  ;;  %s233_s1 = smov [#allocation3]  }
   0xa   :  { %v198_v25 = vpack.c.bf16 %v32_v24, %v31_v23  ;;  %s116_s21 = sshll.u32 %s233_s1, 4  ;;  %s117_s21 = int_to_ptr.vmem [resolvable:$true] %s116_s21 }
   0xb   :  { %s206_s22 = scalar_lea.vmem %s117_s21, 32  ;;  %p211_p1 = scmp.lt.s32.totalorder %s117_s21, %s117_s21 }
   0xc   :  { %184 = vmatpush3.bf16.msra.mxu0 %v183_v10  ;;  %p207_p0 = scmp.ne.s32.totalorder %s117_s21, %s206_s22  ;;  %p212_p2 = scmp.lt.s32.totalorder %s206_s22, %s206_s22 }
   0xd   :  { %185 = vmatprep.subr.bf16.mxu0 %v230_v3 }
   0xe   :  { %p213_p3 = por %p212_p2, %p211_p1 }
  0x10   :  { %187 = vmatpush3.bf16.msra.mxu0 %v186_v13  ;;  %p214_p4 = pnand %p213_p3, %p207_p0 }
  0x11   :  { %188 = vmatprep.subr.bf16.mxu0 %v230_v3 }
  0x14   :  { %190 = vmatpush3.bf16.msra.mxu0 %v189_v16 }
  0x15   :  { %191 = vmatprep.subr.bf16.mxu0 %v230_v3 }
  0x18   :  { %193 = vmatpush3.bf16.msra.mxu0 %v192_v19 }
  0x19   :  { %194 = vmatprep.subr.bf16.mxu0 %v230_v3 }
  0x1c   :  { %196 = vmatpush3.bf16.msra.mxu0 %v195_v22 }
  0x1d   :  { %197 = vmatprep.subr.bf16.mxu0 %v230_v3 }
  0x20   :  { %199 = vmatpush3.bf16.msra.mxu0 %v198_v25 }
  0x23   :  { %174 = vmatmul.mubr.f32.vlgmr.msra.gmra.mrb[0].mxu0 %v16_v26 }
  0xf6   :  { %v101_v28 = vpop.f32.mrb[0].mxu0 }
  0xf7   :  { %v102_v29 = vadd.f32 %v101_v28, %v34_v27  ;;  %v175_v30 = vpop.f32.mrb[1].mxu0 }
  0xf9   :  { %v105_v31 = vsub.f32 %v102_v29, %v102_v29 }
  0xfb   :  { %v106_v32 = vmul.f32 1.442695, %v105_v31 }
  0xfd   :  { %204 = vpow2.f32 %v106_v32 }
 0x107   :  { %v205_v33 = vpop.eup %204 }
 0x108   :  { %109 = vst.msk [vmem:[#allocation3] sm:$0x3] %vm108_vm1, %v205_v33 }
 0x109   :  { %217 = shalt.err (!%p214_p4)
}
 0x10a   :  { %s218_s23 = scalar_lea.hbm %s323_s3, 32 }
 0x10b   :  { %p219_p5 = scmp.ne.s32.totalorder %s323_s3, %s218_s23  ;;  %p222_p6 = scmp.lt.u32.totalorder %s218_s23, %s323_s3 }
 0x10d   :  { %p224_p7 = pnand %p222_p6, %p219_p5 }
 0x10f   :  { %227 = shalt.err (!%p224_p7)
}
 0x110   :  { %119 = dma.vmem_to_hbm [thread:$0]  %s117_s21, 32, %s323_s3, [#allocation4]  }
 0x111   :  { %228 = dma.done.wait [#allocation4], 32  }
 0x112   :  { %229 = vsyncadd [#allocation4], 4294967264 }
 0x113   :  { %123 = vsyncpa [#allocation4], 1 }

</bundles_post_ra>
